<compile_context>
chip_gen: v7x
topology: tpu7x:2x2x1
jax: 0.10.0
libtpu: 0.0.40
codegen_flags: <defaults>
</compile_context>

<pallas_src>
import functools
import math

import jax
import jax.numpy as jnp
from jax.experimental import pallas as pl
from jax.experimental.pallas import tpu as pltpu

EPS = 1e-5  # nn.LayerNorm default


def _round_up(x, m):
    return ((x + m - 1) // m) * m


def _prenorm_linear_kernel(x_ref, gamma_ref, beta_ref, w_ref, b_ref, ones_ref,
                           o_ref, *, stats_on_mxu):
    # x_ref: (TM, D) row tile; gamma/beta/b: (1, D); w, ones: (D, D) bf16.
    x = x_ref[...].astype(jnp.float32)                          # (TM, D)

    if stats_on_mxu:
        # Row reductions on the MXU: dot against a (D, D) matrix of 1/D gives
        # the row mean already broadcast across all D lanes (every output
        # column is the same reduction).  bf16 operands keep the extra MXU
        # cost ~1 matmul each; accumulation stays f32.
        xb = x.astype(jnp.bfloat16)
        mean = jnp.dot(xb, ones_ref[...], preferred_element_type=jnp.float32)
        msq = jnp.dot(xb * xb, ones_ref[...], preferred_element_type=jnp.float32)
    else:
        # XLU cross-lane reductions (free filler under DMA on v5e/v6e).
        mean = jnp.mean(x, axis=-1, keepdims=True)
        msq = jnp.mean(x * x, axis=-1, keepdims=True)

    var = jnp.maximum(msq - mean * mean, 0.0)
    inv = jax.lax.rsqrt(var + EPS)                              # EUP
    y = (x - mean) * inv
    y = y * gamma_ref[...].astype(jnp.float32) + beta_ref[...].astype(jnp.float32)

    # fn: Linear(D, D) on the MXU, bf16 operands, f32 accumulation.
    out = jnp.dot(y.astype(jnp.bfloat16), w_ref[...],
                  preferred_element_type=jnp.float32)           # (TM, D)
    out = out + b_ref[...].astype(jnp.float32)

    # Rows of a ragged last block that fall past M are dropped by Pallas on
    # writeback, so no explicit mask is needed here.
    o_ref[...] = out.astype(o_ref.dtype)


def prenorm_linear(x, gamma, beta, w, b, *, tm=None, out_dtype=None,
                   stats_on_mxu=True):
    """x: (..., D); gamma/beta/b: (D,); w: (D, D) laid out (in_dim, out_dim)."""
    *lead, D = x.shape
    M = math.prod(lead) if lead else 1
    x2 = x.reshape(M, D)                                        # metadata-only
    out_dtype = x.dtype if out_dtype is None else out_dtype

    # Row-tile selection (memory-bound kernel): big DMA blocks, but keep >= ~4
    # grid steps for pipelining / v7x dual-TC sharding, and >= 8 rows.
    if tm is None:
        tm = 2048 if M >= 8 * 2048 else 1024
    tm = min(tm, max(8, _round_up(pl.cdiv(M, 4), 8)))
    grid_m = pl.cdiv(M, tm)        # ragged last block handled by OOB masking

    gamma2 = gamma.reshape(1, D).astype(jnp.float32)
    beta2 = beta.reshape(1, D).astype(jnp.float32)
    b2 = b.reshape(1, D).astype(jnp.float32)
    w_bf16 = w.astype(jnp.bfloat16)                             # halves weight DMA/VMEM
    ones_dd = jnp.full((D, D), 1.0 / D, dtype=jnp.bfloat16)     # row-mean projector

    in_sz = jnp.dtype(x.dtype).itemsize
    out_sz = jnp.dtype(out_dtype).itemsize
    cost = pl.CostEstimate(
        flops=2 * M * D * D * (3 if stats_on_mxu else 1),
        transcendentals=M * (D if stats_on_mxu else 1),         # rsqrt
        bytes_accessed=(M * D * in_sz + M * D * out_sz          # x in, out
                        + 2 * D * D * 2                         # bf16 w + ones
                        + 3 * D * 4),                           # gamma, beta, b
    )

    kernel = functools.partial(_prenorm_linear_kernel, stats_on_mxu=stats_on_mxu)

    out = pl.pallas_call(
        kernel,
        out_shape=jax.ShapeDtypeStruct((M, D), out_dtype),
        grid_spec=pltpu.PrefetchScalarGridSpec(
            num_scalar_prefetch=0,
            grid=(grid_m,),
            in_specs=[
                pl.BlockSpec((tm, D), lambda i: (i, 0)),        # x rows
                pl.BlockSpec((1, D), lambda i: (0, 0)),         # gamma
                pl.BlockSpec((1, D), lambda i: (0, 0)),         # beta
                # TODO(synk): pipeline_mode=pl.Buffered(1) here for large D.
                pl.BlockSpec((D, D), lambda i: (0, 0)),         # fn weight (bf16)
                pl.BlockSpec((1, D), lambda i: (0, 0)),         # fn bias
                pl.BlockSpec((D, D), lambda i: (0, 0)),         # 1/D projector (bf16)
            ],
            out_specs=pl.BlockSpec((tm, D), lambda i: (i, 0)),
        ),
        compiler_params=pltpu.CompilerParams(
            dimension_semantics=("parallel",),
            vmem_limit_bytes=32 * 1024 * 1024,
        ),
        cost_estimate=cost,
    )(x2, gamma2, beta2, w_bf16, b2, ones_dd)

    return out.reshape(*lead, D)


def prenorm_linear_ref(x, gamma, beta, w, b):
    xf = x.astype(jnp.float32)
    mean = jnp.mean(xf, axis=-1, keepdims=True)
    var = jnp.mean((xf - mean) ** 2, axis=-1, keepdims=True)
    xn = (xf - mean) * jax.lax.rsqrt(var + EPS)
    y = xn * gamma + beta
    return (jnp.einsum("...nd,de->...ne", y, w.astype(jnp.float32)) + b).astype(x.dtype)


if __name__ == "__main__":
    D = 128
    key = jax.random.PRNGKey(0)
    kx, kw, kb, kx2 = jax.random.split(key, 4)

    # LayerNorm params: PyTorch default init (weight=1, bias=0).
    gamma = jnp.ones((D,), dtype=jnp.float32)
    beta = jnp.zeros((D,), dtype=jnp.float32)

    # fn = Linear(D, D): deterministic synthetic init (stored as (in, out)).
    w = (jax.random.normal(kw, (D, D), dtype=jnp.float32) / jnp.sqrt(D))
    b = jax.random.normal(kb, (D,), dtype=jnp.float32) * 0.01

    # Case 1: divisible rows (B=2, N=8 -> M=16).
    x = jax.random.normal(kx, (2, 8, D), dtype=jnp.float32)
    out = jax.block_until_ready(prenorm_linear(x, gamma, beta, w, b))
    ref = prenorm_linear_ref(x, gamma, beta, w, b)
    assert out.shape == x.shape
    assert jnp.allclose(out, ref, atol=3e-2, rtol=3e-2), "mismatch (divisible M)"

    # Case 2: ragged last block (B=3, N=5 -> M=15, tm=8) exercises OOB masking.
    x2 = jax.random.normal(kx2, (3, 5, D), dtype=jnp.float32)
    out2 = jax.block_until_ready(prenorm_linear(x2, gamma, beta, w, b))
    ref2 = prenorm_linear_ref(x2, gamma, beta, w, b)
    assert out2.shape == x2.shape
    assert jnp.allclose(out2, ref2, atol=3e-2, rtol=3e-2), "mismatch (ragged M)"

    print("KERNEL_OK")
</pallas_src>

<mosaic_0001>
module attributes {stable_mosaic.version = 11 : i64} {
  func.func @_prenorm_linear_kernel(%arg0: i32, %arg1: memref<8x128xf32, #tpu.memory_space<vmem>>, %arg2: memref<1x128xf32, #tpu.memory_space<vmem>>, %arg3: memref<1x128xf32, #tpu.memory_space<vmem>>, %arg4: memref<128x128xbf16, #tpu.memory_space<vmem>>, %arg5: memref<1x128xf32, #tpu.memory_space<vmem>>, %arg6: memref<128x128xbf16, #tpu.memory_space<vmem>>, %arg7: memref<8x128xf32, #tpu.memory_space<vmem>>) attributes {dimension_semantics = [#tpu.dimension_semantics<parallel>], iteration_bounds = array<i64: 2>, scalar_prefetch = 0 : i64, scratch_operands = 0 : i64, tpu.core_type = #tpu.core_type<tc>, window_params = [{transform_indices = @transform_0, window_bounds = array<i64: 8, 128>}, {pipeline_mode = #tpu.pipeline_mode<synchronous>, transform_indices = @transform_1, window_bounds = array<i64: 1, 128>}, {pipeline_mode = #tpu.pipeline_mode<synchronous>, transform_indices = @transform_2, window_bounds = array<i64: 1, 128>}, {pipeline_mode = #tpu.pipeline_mode<synchronous>, transform_indices = @transform_3, window_bounds = array<i64: 128, 128>}, {pipeline_mode = #tpu.pipeline_mode<synchronous>, transform_indices = @transform_4, window_bounds = array<i64: 1, 128>}, {pipeline_mode = #tpu.pipeline_mode<synchronous>, transform_indices = @transform_5, window_bounds = array<i64: 128, 128>}, {transform_indices = @transform_6, window_bounds = array<i64: 8, 128>}]} {
    %c0 = arith.constant 0 : index
    %c0_0 = arith.constant 0 : index
    %0 = vector.load %arg1[%c0, %c0_0] : memref<8x128xf32, #tpu.memory_space<vmem>>, vector<8x128xf32>
    %1 = arith.truncf %0 : vector<8x128xf32> to vector<8x128xbf16>
    %c0_1 = arith.constant 0 : index
    %c0_2 = arith.constant 0 : index
    %2 = vector.load %arg6[%c0_1, %c0_2] : memref<128x128xbf16, #tpu.memory_space<vmem>>, vector<128x128xbf16>
    %cst = arith.constant dense<0.000000e+00> : vector<8x128xf32>
    %3 = tpu.matmul %1, %2, %cst {dimension_numbers = #tpu.dot_dimension_numbers<[1], [0], [0], [1], [0, 0, 1, 1], [], []>} : vector<8x128xbf16>, vector<128x128xbf16>, vector<8x128xf32> -> vector<8x128xf32>
    %4 = arith.mulf %1, %1 : vector<8x128xbf16>
    %c0_3 = arith.constant 0 : index
    %c0_4 = arith.constant 0 : index
    %5 = vector.load %arg6[%c0_3, %c0_4] : memref<128x128xbf16, #tpu.memory_space<vmem>>, vector<128x128xbf16>
    %cst_5 = arith.constant dense<0.000000e+00> : vector<8x128xf32>
    %6 = tpu.matmul %4, %5, %cst_5 {dimension_numbers = #tpu.dot_dimension_numbers<[1], [0], [0], [1], [0, 0, 1, 1], [], []>} : vector<8x128xbf16>, vector<128x128xbf16>, vector<8x128xf32> -> vector<8x128xf32>
    %7 = arith.mulf %3, %3 : vector<8x128xf32>
    %8 = arith.subf %6, %7 : vector<8x128xf32>
    %cst_6 = arith.constant 0.000000e+00 : f32
    %9 = vector.broadcast %cst_6 : f32 to vector<8x128xf32>
    %10 = arith.maximumf %8, %9 : vector<8x128xf32>
    %cst_7 = arith.constant 9.99999974E-6 : f32
    %11 = vector.broadcast %cst_7 : f32 to vector<8x128xf32>
    %12 = arith.addf %10, %11 : vector<8x128xf32>
    %13 = math.rsqrt %12 : vector<8x128xf32>
    %14 = arith.subf %0, %3 : vector<8x128xf32>
    %15 = arith.mulf %14, %13 : vector<8x128xf32>
    %c0_8 = arith.constant 0 : index
    %c0_9 = arith.constant 0 : index
    %16 = vector.load %arg2[%c0_8, %c0_9] : memref<1x128xf32, #tpu.memory_space<vmem>>, vector<1x128xf32>
    %17 = vector.broadcast %16 : vector<1x128xf32> to vector<8x128xf32>
    %18 = arith.mulf %15, %17 : vector<8x128xf32>
    %c0_10 = arith.constant 0 : index
    %c0_11 = arith.constant 0 : index
    %19 = vector.load %arg3[%c0_10, %c0_11] : memref<1x128xf32, #tpu.memory_space<vmem>>, vector<1x128xf32>
    %20 = vector.broadcast %19 : vector<1x128xf32> to vector<8x128xf32>
    %21 = arith.addf %18, %20 : vector<8x128xf32>
    %22 = arith.truncf %21 : vector<8x128xf32> to vector<8x128xbf16>
    %c0_12 = arith.constant 0 : index
    %c0_13 = arith.constant 0 : index
    %23 = vector.load %arg4[%c0_12, %c0_13] : memref<128x128xbf16, #tpu.memory_space<vmem>>, vector<128x128xbf16>
    %cst_14 = arith.constant dense<0.000000e+00> : vector<8x128xf32>
    %24 = tpu.matmul %22, %23, %cst_14 {dimension_numbers = #tpu.dot_dimension_numbers<[1], [0], [0], [1], [0, 0, 1, 1], [], []>} : vector<8x128xbf16>, vector<128x128xbf16>, vector<8x128xf32> -> vector<8x128xf32>
    %c0_15 = arith.constant 0 : index
    %c0_16 = arith.constant 0 : index
    %25 = vector.load %arg5[%c0_15, %c0_16] : memref<1x128xf32, #tpu.memory_space<vmem>>, vector<1x128xf32>
    %26 = vector.broadcast %25 : vector<1x128xf32> to vector<8x128xf32>
    %27 = arith.addf %24, %26 : vector<8x128xf32>
    %c0_17 = arith.constant 0 : index
    %c0_18 = arith.constant 0 : index
    %28 = vector.load %arg7[%c0_17, %c0_18] : memref<8x128xf32, #tpu.memory_space<vmem>>, vector<8x128xf32>
    tpu.vector_store %arg7[%c0_17, %c0_18], %27 {strides = array<i32>} : memref<8x128xf32, #tpu.memory_space<vmem>>, vector<8x128xf32>,
    return
  }
  func.func @transform_0(%arg0: i32) -> (i32, i32) {
    %c0_i32 = arith.constant 0 : i32
    %c0_i32_0 = arith.constant 0 : i32
    return %arg0, %c0_i32 : i32, i32
  }
  func.func @transform_1(%arg0: i32) -> (i32, i32) {
    %c0_i32 = arith.constant 0 : i32
    %c0_i32_0 = arith.constant 0 : i32
    %c0_i32_1 = arith.constant 0 : i32
    return %c0_i32, %c0_i32_0 : i32, i32
  }
  func.func @transform_2(%arg0: i32) -> (i32, i32) {
    %c0_i32 = arith.constant 0 : i32
    %c0_i32_0 = arith.constant 0 : i32
    %c0_i32_1 = arith.constant 0 : i32
    return %c0_i32, %c0_i32_0 : i32, i32
  }
  func.func @transform_3(%arg0: i32) -> (i32, i32) {
    %c0_i32 = arith.constant 0 : i32
    %c0_i32_0 = arith.constant 0 : i32
    %c0_i32_1 = arith.constant 0 : i32
    return %c0_i32, %c0_i32_0 : i32, i32
  }
  func.func @transform_4(%arg0: i32) -> (i32, i32) {
    %c0_i32 = arith.constant 0 : i32
    %c0_i32_0 = arith.constant 0 : i32
    %c0_i32_1 = arith.constant 0 : i32
    return %c0_i32, %c0_i32_0 : i32, i32
  }
  func.func @transform_5(%arg0: i32) -> (i32, i32) {
    %c0_i32 = arith.constant 0 : i32
    %c0_i32_0 = arith.constant 0 : i32
    %c0_i32_1 = arith.constant 0 : i32
    return %c0_i32, %c0_i32_0 : i32, i32
  }
  func.func @transform_6(%arg0: i32) -> (i32, i32) {
    %c0_i32 = arith.constant 0 : i32
    %c0_i32_0 = arith.constant 0 : i32
    return %arg0, %c0_i32 : i32, i32
  }
}

</mosaic_0001>

<bundles_post_ra>
// kernel: tpu_custom_call.1
= control target key start
LH: loop header
LB: loop body
LE: loop exit
PB: predicated region body
PF: predicated region fallthrough
CT: control target
= control target key end

     0   :  { %11 = vsyncpa [#allocation3], 0  ;;  %s1370_s0 = inlined_call_operand.hbm [shape: f32[16,128], index: 0, kind: input, shape index: {}]   ;;  %s1371_s1 = inlined_call_operand.vmem [shape: f32[1,128], index: 1, kind: input, shape index: {}]   ;;  %s1372_s2 = inlined_call_operand.vmem [shape: f32[1,128], index: 2, kind: input, shape index: {}]   ;;  %s1373_s3 = inlined_call_operand.hbm [shape: bf16[128,128], index: 3, kind: input, shape index: {}]   ;;  %s1374_s4 = inlined_call_operand.vmem [shape: f32[1,128], index: 4, kind: input, shape index: {}]   ;;  %s1375_s5 = inlined_call_operand.hbm [shape: bf16[128,128], index: 5, kind: input, shape index: {}]   ;;  %s1376_s6 = inlined_call_operand.hbm [shape: f32[16,128], index: 6, kind: output, shape index: {}]  }
   0x1   :  { %13 = vsyncpa [#allocation3 + $0x1], 0 }
   0x2   :  { %14 = vsyncpa [#allocation6], 0 }
   0x3   :  { %15 = vsyncpa [#allocation4], 0 }
   0x4   :  { %17 = vsyncpa [#allocation4 + $0x1], 0  ;;  %s1095_s21 = smov 0   ;;  %s1097_s22 = smov 0  }
   0x5   :  { %s1099_s23 = smov 0   ;;  %s1101_s24 = smov 0  }
   0x6 LB: > { %s1116_s25 = sadd.s32 4294967295, %s1050_s24   ;;  %s683_s26 = sadd.s32 4294967294, %s1050_s24   ;;  %s1050_s24 = sphi %s1101_s24, %s1396_s24   ;;  %s1046_s23 = sphi %s1099_s23, %s1395_s23   ;;  %s1042_s22 = sphi %s1097_s22, %s1394_s22   ;;  %s1038_s21 = sphi %s1095_s21, %s1393_s21  }
   0x7   : > { %p43_p0 = scmp.ne.s32.totalorder %s1042_s22, %s1038_s21  ;;  %p1377_p1 = scmp.eq.s32.totalorder %s1116_s25, 0 }
   0x8   : > { %p178_p3 = scmp.eq.s32.totalorder %s683_s26, 1  ;;  %p684_p5 = scmp.ge.s32.totalorder %s1050_s24, 1 }
   0x9   : > { %p1125_p4 = por %p1377_p1, %p43_p0  ;;  %p185_p7 = scmp.lt.s32.totalorder %s1050_s24, 3 }
   0xa   : > { %p1130_p6 = por %p178_p3, %p43_p0  ;;  %s1052_s30 = smov [#allocation5]  }
   0xb   : > { %s1380_s27 = scalar_select %p1125_p4, 1, 0 }
   0xc   : > { %s1381_s28 = scalar_select %p1130_p6, 1, 0 }
   0xd   : > { %p1135_p8 = pnand %p684_p5, %p185_p7  ;;  %s203_s7 = sshll.u32 %s1052_s30, 4  ;;  %s1139_s7 = int_to_ptr.vmem [resolvable:$true] %s203_s7 }
   0xe   : > { %s1053_s9 = smov [#allocation7]   ;;  %s894_s13 = scalar_lea.hbm %s1373_s3, 1024 }
   0xf   : > { %p817_p9 = pneg %p1135_p8  ;;  %s219_s10 = sshll.u32 %s1053_s9, 4  ;;  %s1150_s10 = int_to_ptr.vmem [resolvable:$true] %s219_s10 }
  0x10   : > { %p895_p12 = scmp.ne.s32.totalorder %s1373_s3, %s894_s13  ;;  %p901_p5 = scmp.lt.u32.totalorder %s894_s13, %s1373_s3 }
  0x11   : > { %p1146_p11 = pnand %p817_p9, %p1377_p1 }
  0x13   : > { %p896_p13 = pneg %p1146_p11 }
  0x15   : > { %p897_p0 = pnand %p896_p13, %p895_p12 }
  0x17   : > { %p898_p3 = pneg %p897_p0 }
  0x19   : > { %p903_p7 = pnand %p901_p5, %p898_p3 }
  0x1b   : > { %906 = shalt.err (!%p903_p7)
}
  0x1c   : > { %s907_s18 = scalar_lea.vmem %s1139_s7, 1024  ;;  %p915_p2 = scmp.lt.s32.totalorder %s1139_s7, %s1139_s7 }
  0x1d   : > { %p908_p9 = scmp.ne.s32.totalorder %s1139_s7, %s907_s18  ;;  %p916_p12 = scmp.lt.s32.totalorder %s907_s18, %s907_s18 }
  0x1f   : > { %p910_p10 = pnand %p908_p9, %p896_p13  ;;  %p917_p0 = por %p916_p12, %p915_p2 }
  0x21   : > { %p911_p1 = pneg %p910_p10 }
  0x23   : > { %p918_p6 = pnand %p917_p0, %p911_p1 }
  0x25   : > { %921 = shalt.err (!%p918_p6)
}
  0x26   : > { %s1054_s19 = smov 64   ;;  %s1055_s20 = smov 4  }
  0x27   : > { %820 = dma.hbm_to_vmem [thread:$0]  (!%p1146_p11), %s1373_s3, 1024, %s1139_s7, [#allocation6], %s1054_s19, %s1054_s19, %s1055_s20  }
  0x28   : > { %s922_s12 = scalar_lea.hbm %s1375_s5, 1024 }
  0x29   : > { %p923_p2 = scmp.ne.s32.totalorder %s1375_s5, %s922_s12  ;;  %p929_p10 = scmp.lt.u32.totalorder %s922_s12, %s1375_s5 }
  0x2b   : > { %p925_p1 = pnand %p923_p2, %p896_p13 }
  0x2d   : > { %p926_p6 = pneg %p925_p1 }
  0x2f   : > { %p931_p3 = pnand %p929_p10, %p926_p6 }
  0x31   : > { %934 = shalt.err (!%p931_p3)
}
  0x32   : > { %s935_s7 = scalar_lea.vmem %s1150_s10, 1024  ;;  %p943_p12 = scmp.lt.s32.totalorder %s1150_s10, %s1150_s10 }
  0x33   : > { %p936_p5 = scmp.ne.s32.totalorder %s1150_s10, %s935_s7  ;;  %p944_p0 = scmp.lt.s32.totalorder %s935_s7, %s935_s7 }
  0x35   : > { %p938_p7 = pnand %p936_p5, %p896_p13  ;;  %p945_p2 = por %p944_p0, %p943_p12 }
  0x37   : > { %p939_p9 = pneg %p938_p7 }
  0x39   : > { %p946_p1 = pnand %p945_p2, %p939_p9 }
  0x3b   : > { %949 = shalt.err (!%p946_p1)
}
  0x3c   : > { %823 = dma.hbm_to_vmem [thread:$0]  (!%p1146_p11), %s1375_s5, 1024, %s1150_s10, [#allocation6], %s1054_s19, %s1054_s19, %s1055_s20  }
  0x3d   : > { %s1205_s26 = sadd.s32 1, %s1050_s24   ;;  %s30_s8 = sadd.s32 1, %s1046_s23 }
  0x3e   : > { %s27_s30 = ssub.s32 %s1050_s24, %s1205_s26  ;;  %p37_p13 = scmp.ne.s32.totalorder %s1046_s23, %s1042_s22 }
  0x3f   : > { %p28_p6 = scmp.eq.s32.totalorder %s27_s30, 0  ;;  %p38_p10 = scmp.eq.s32.totalorder %s1050_s24, 0 }
  0x40   : > { %p1384_p3 = scmp.eq.s32.totalorder %s1116_s25, 1  ;;  %p834_p7 = scmp.lt.s32.totalorder %s1050_s24, 2 }
  0x41   : > { %s1221_s11 = scalar_select %p28_p6, %s1046_s23, %s30_s8  }
  0x42   : > { %p1215_p5 = por %p1384_p3, %p37_p13  ;;  %p39_p9 = por %p38_p10, %p37_p13 }
  0x43   : > { %s233_s12 = sand.u32 1, %s1046_s23   ;;  %s689_s10 = sshll.u32 %s1050_s24, 7 }
  0x44   : > { %s1385_s9 = scalar_select %p1215_p5, 1, 0 }
  0x45   : > { %s688_s13 = sshll.u32 %s233_s12, 3  ;;  %s1228_s14 = scalar_lea.hbm %s1370_s0, %s689_s10 }
  0x46   : > { %s237_s15 = scalar_lea.vmem [#allocation2], %s688_s13  ;;  %p1232_p11 = pnand %p834_p7, %p39_p9 }
  0x47   : > { %s244_s16 = sshll.u32 %s237_s15, 4  ;;  %s234_s17 = scalar_lea.sflag [#allocation3], %s233_s12  ;;  %s1230_s16 = int_to_ptr.vmem [resolvable:$true] %s244_s16 }
  0x48   : > { %s950_s18 = scalar_lea.hbm %s1228_s14, 128  ;;  %p952_p0 = pneg %p1232_p11 }
  0x49   : > { %p951_p12 = scmp.ne.s32.totalorder %s1228_s14, %s950_s18  ;;  %s955_s13 = scalar_lea.hbm %s1370_s0, 256 }
  0x4a   : > { %p956_p13 = scmp.lt.u32.totalorder %s1228_s14, %s1370_s0  ;;  %p957_p6 = scmp.lt.u32.totalorder %s955_s13, %s950_s18 }
  0x4b   : > { %p953_p2 = pnand %p952_p0, %p951_p12  ;;  %p959_p3 = scmp.lt.u32.totalorder %s950_s18, %s1228_s14 }
  0x4c   : > { %p958_p10 = por %p957_p6, %p956_p13 }
  0x4d   : > { %p954_p1 = pneg %p953_p2 }
  0x4e   : > { %p960_p7 = por %p959_p3, %p958_p10 }
  0x50   : > { %p961_p9 = pnand %p960_p7, %p954_p1 }
  0x52   : > { %964 = shalt.err (!%p961_p9)
}
  0x53   : > { %s965_s12 = scalar_lea.vmem %s1230_s16, 128  ;;  %s1056_s20 = smov [#allocation2]  }
  0x54   : > { %p966_p12 = scmp.ne.s32.totalorder %s1230_s16, %s965_s12  ;;  %s970_s15 = sshll.u32 %s1056_s20, 4  ;;  %s971_s15 = int_to_ptr.vmem [resolvable:$false] %s970_s15 }
  0x55   : > { %s972_s8 = scalar_lea.vmem %s971_s15, 256  ;;  %p973_p4 = scmp.lt.s32.totalorder %s1230_s16, %s971_s15 }
  0x56   : > { %p968_p2 = pnand %p966_p12, %p952_p0  ;;  %p974_p13 = scmp.lt.s32.totalorder %s972_s8, %s965_s12 }
  0x58   : > { %p969_p5 = pneg %p968_p2  ;;  %p975_p6 = por %p974_p13, %p973_p4 }
  0x5a   : > { %p976_p10 = pnand %p975_p6, %p969_p5 }
  0x5c   : > { %979 = shalt.err (!%p976_p10)
}
  0x5d   : > { %827 = dma.hbm_to_vmem [thread:$0]  (!%p1232_p11), %s1228_s14, 128, %s1230_s16, %s234_s17  }
  0x5e   : > { %253 = sbr.rel (%p1135_p8) target bundleno = 606 (0x25e), region = 44  ;;  %s1264_s18 = sand.u32 (!%p1135_p8), 1, %s1042_s22  }
  0x5f   : > { %s691_s30 = sshll.u32 (!%p1135_p8), %s1264_s18, 3  ;;  %s256_s13 = scalar_lea.sflag (!%p1135_p8), [#allocation3], %s1264_s18 }
  0x60   : > { %s1270_s10 = scalar_lea.vmem (!%p1135_p8), [#allocation2], %s691_s30  ;;  %p1387_p4 = scmp.ne.s32.totalorder (!%p1135_p8), %s1380_s27, 0 }
  0x65   : > { %1025 = dma.done.wait (%p1387_p4), %s256_s13, 128  }
  0x66   : > { %1027 = vsyncadd (%p1387_p4), %s256_s13, 4294967168  ;;  %p1388_p5 = scmp.eq.s32.totalorder %s1116_s25, 0 }
  0x68   : > { %1029 = dma.done.wait (%p1388_p5), [#allocation6], 2048   ;;  %p1389_p8 = pmov %p1388_p5 }
  0x69   : > { %v1057_v0 = vmov 0.0   ;;  %vm1058_vm0 = vmmov 0   ;;  %v876_v1 = vld [vmem:[#allocation7] sm:$0xff]   ;;  %v877_v2 = vld [vmem:[#allocation7 + $0x8] sm:$0xff]   ;;  %v878_v3 = vld [vmem:[#allocation7 + $0x10] sm:$0xff]   ;;  %s715_s19 = sshll.u32 %s1116_s25, 7 }
  0x6a   : > { %1031 = vsyncadd (%p1389_p8), [#allocation6], 4294965248  ;;  %745 = vmatprep.subr.bf16.mxu0 %v1057_v0  ;;  %765 = vmatprep.subr.bf16.mxu1 %v1057_v0  ;;  %v879_v4 = vld [vmem:[#allocation7 + $0x18] sm:$0xff]   ;;  %v880_v5 = vld [vmem:[#allocation7 + $0x20] sm:$0xff]   ;;  %s295_s12 = scalar_lea.vmem [#allocation8], %s691_s30  ;;  %s1326_s13 = scalar_lea.hbm %s1376_s6, %s715_s19 }
  0x6b   : > { %761 = vmatprep.mubr.msk.bf16.mxu0 %vm1058_vm0, %v1057_v0  ;;  %781 = vmatprep.mubr.msk.bf16.mxu1 %vm1058_vm0, %v1057_v0  ;;  %v881_v6 = vld [vmem:[#allocation7 + $0x28] sm:$0xff]   ;;  %v882_v7 = vld [vmem:[#allocation7 + $0x30] sm:$0xff]   ;;  %v883_v10 = vld [vmem:[#allocation7 + $0x38] sm:$0xff]   ;;  %s594_s20 = sshll.u32 %s295_s12, 4  ;;  %s581_s25 = scalar_lea.sflag [#allocation4], %s1264_s18  ;;  %s1328_s20 = int_to_ptr.vmem [resolvable:$true] %s594_s20 }
  0x6c   : > { %746 = vmatpush3.bf16.msra.mxu0 %v876_v1  ;;  %766 = vmatpush3.bf16.msra.mxu1 %v876_v1  ;;  %v297_v8 = vld [vmem:[%s1270_s10] sm:$0xff]  ;;  %v884_v12 = vld [vmem:[#allocation5] sm:$0xff]   ;;  %v885_v13 = vld [vmem:[#allocation5 + $0x8] sm:$0xff]   ;;  %s980_s10 = scalar_lea.vmem %s1328_s20, 128  ;;  %p1390_p0 = scmp.ne.s32.totalorder %s1385_s9, 0 }
  0x6d   : > { %747 = vmatprep.subr.bf16.mxu0 %v1057_v0  ;;  %767 = vmatprep.subr.bf16.mxu1 %v1057_v0  ;;  %v298_v9 = vpack.c.bf16 %v297_v8, %v297_v8  ;;  %v886_v14 = vld [vmem:[#allocation5 + $0x10] sm:$0xff]   ;;  %v887_v15 = vld [vmem:[#allocation5 + $0x18] sm:$0xff]   ;;  %v888_v16 = vld [vmem:[#allocation5 + $0x20] sm:$0xff]   ;;  %p981_p11 = scmp.ne.s32.totalorder %s1328_s20, %s980_s10  ;;  %s1059_s30 = smov [#allocation8]  }
  0x6e   : > { %v889_v17 = vld [vmem:[#allocation5 + $0x28] sm:$0xff]   ;;  %v890_v18 = vld [vmem:[#allocation5 + $0x30] sm:$0xff]   ;;  %v891_v19 = vld [vmem:[#allocation5 + $0x38] sm:$0xff]   ;;  %s984_s27 = sshll.u32 %s1059_s30, 4  ;;  %s985_s27 = int_to_ptr.vmem [resolvable:$false] %s984_s27 }
  0x6f   : > { %v403_v11 = vmul.bf16 %v298_v9, %v298_v9  ;;  %v703_v34 = vld [vmem:[%s1371_s1] ss:$0 sm:$0xff]  ;;  %p982_p1 = pnand %p981_p11, %p1390_p0  ;;  %s986_s29 = scalar_lea.vmem %s985_s27, 256 }
  0x70   : > { %748 = vmatpush3.bf16.msra.mxu0 %v877_v2  ;;  %768 = vmatpush3.bf16.msra.mxu1 %v877_v2  ;;  %v704_v36 = vld [vmem:[%s1372_s2] ss:$0 sm:$0xff]  ;;  %p987_p7 = scmp.lt.s32.totalorder %s1328_s20, %s985_s27  ;;  %p988_p9 = scmp.lt.s32.totalorder %s986_s29, %s980_s10 }
  0x71   : > { %749 = vmatprep.subr.bf16.mxu0 %v1057_v0  ;;  %769 = vmatprep.subr.bf16.mxu1 %v1057_v0  ;;  %v705_v40 = vld [vmem:[%s1374_s4] ss:$0 sm:$0xff]  ;;  %p983_p3 = pneg %p982_p1 }
  0x72   : > { %p989_p12 = por %p988_p9, %p987_p7 }
  0x74   : > { %750 = vmatpush3.bf16.msra.mxu0 %v878_v3  ;;  %770 = vmatpush3.bf16.msra.mxu1 %v878_v3  ;;  %p990_p2 = pnand %p989_p12, %p983_p3 }
  0x75   : > { %751 = vmatprep.subr.bf16.mxu0 %v1057_v0  ;;  %771 = vmatprep.subr.bf16.mxu1 %v1057_v0 }
  0x78   : > { %752 = vmatpush3.bf16.msra.mxu0 %v879_v4  ;;  %772 = vmatpush3.bf16.msra.mxu1 %v879_v4 }
  0x79   : > { %753 = vmatprep.subr.bf16.mxu0 %v1057_v0  ;;  %773 = vmatprep.subr.bf16.mxu1 %v1057_v0 }
  0x7c   : > { %754 = vmatpush3.bf16.msra.mxu0 %v880_v5  ;;  %774 = vmatpush3.bf16.msra.mxu1 %v880_v5 }
  0x7d   : > { %755 = vmatprep.subr.bf16.mxu0 %v1057_v0  ;;  %775 = vmatprep.subr.bf16.mxu1 %v1057_v0 }
  0x80   : > { %756 = vmatpush3.bf16.msra.mxu0 %v881_v6  ;;  %776 = vmatpush3.bf16.msra.mxu1 %v881_v6 }
  0x81   : > { %757 = vmatprep.subr.bf16.mxu0 %v1057_v0  ;;  %777 = vmatprep.subr.bf16.mxu1 %v1057_v0 }
  0x84   : > { %758 = vmatpush3.bf16.msra.mxu0 %v882_v7  ;;  %778 = vmatpush3.bf16.msra.mxu1 %v882_v7 }
  0x85   : > { %759 = vmatprep.subr.bf16.mxu0 %v1057_v0  ;;  %779 = vmatprep.subr.bf16.mxu1 %v1057_v0 }
  0x88   : > { %760 = vmatpush3.bf16.msra.mxu0 %v883_v10  ;;  %780 = vmatpush3.bf16.msra.mxu1 %v883_v10 }
  0x89   : > { %785 = vmatprep.subr.bf16.mxu0 %v1057_v0 }
  0x8b   : > { %762 = vmatmul.mubr.bf16.vlgmr.msra.gmra.mrb[0].mxu0 %v298_v9  ;;  %782 = vmatmul.mubr.bf16.vlgmr.msra.gmra.mrb[0].mxu1 %v403_v11 }
  0x8c   : > { %786 = vmatpush3.bf16.msra.mxu0 %v884_v12  ;;  %801 = vmatprep.mubr.msk.bf16.mxu0 %vm1058_vm0, %v1057_v0 }
  0x8d   : > { %787 = vmatprep.subr.bf16.mxu0 %v1057_v0 }
  0x90   : > { %788 = vmatpush3.bf16.msra.mxu0 %v885_v13 }
  0x91   : > { %789 = vmatprep.subr.bf16.mxu0 %v1057_v0 }
  0x94   : > { %790 = vmatpush3.bf16.msra.mxu0 %v886_v14 }
  0x95   : > { %791 = vmatprep.subr.bf16.mxu0 %v1057_v0 }
  0x98   : > { %792 = vmatpush3.bf16.msra.mxu0 %v887_v15 }
  0x99   : > { %793 = vmatprep.subr.bf16.mxu0 %v1057_v0 }
  0x9c   : > { %794 = vmatpush3.bf16.msra.mxu0 %v888_v16 }
  0x9d   : > { %795 = vmatprep.subr.bf16.mxu0 %v1057_v0 }
  0xa0   : > { %796 = vmatpush3.bf16.msra.mxu0 %v889_v17 }
  0xa1   : > { %797 = vmatprep.subr.bf16.mxu0 %v1057_v0 }
  0xa4   : > { %798 = vmatpush3.bf16.msra.mxu0 %v890_v18 }
  0xa5   : > { %799 = vmatprep.subr.bf16.mxu0 %v1057_v0 }
  0xa8   : > { %800 = vmatpush3.bf16.msra.mxu0 %v891_v19 }
 0x15e   : > { %v397_v20 = vpop.f32.mrb[0].mxu0  ;;  %v438_v21 = vpop.f32.mrb[0].mxu1 }
 0x15f   : > { %v444_v22 = vmul.f32 %v397_v20, %v397_v20  ;;  %v763_v23 = vpop.f32.mrb[1].mxu0  ;;  %v783_v24 = vpop.f32.mrb[1].mxu1  ;;  %v449_v32 = vsub.f32 %v297_v8, %v397_v20 }
 0x160   : > { %v400_v25 = vpop.f32.mrb[2].mxu0  ;;  %v441_v26 = vpop.f32.mrb[2].mxu1 }
 0x161   : > { %v445_v27 = vsub.f32 %v438_v21, %v444_v22  ;;  %v764_v28 = vpop.f32.mrb[3].mxu0  ;;  %v784_v29 = vpop.f32.mrb[3].mxu1 }
 0x163   : > { %v446_v30 = vmax.f32 %v445_v27, 0.0 }
 0x165   : > { %v447_v31 = vadd.f32 1e-05, %v446_v30 }
 0x167   : > { %892 = vrsqrt.f32 %v447_v31 }
 0x171   : > { %v893_v33 = vpop.eup %892 }
 0x172   : > { %v450_v35 = vmul.f32 %v893_v33, %v449_v32 }
 0x174   : > { %v458_v37 = vmul.f32 %v703_v34, %v450_v35 }
 0x176   : > { %v466_v38 = vadd.f32 %v704_v36, %v458_v37 }
 0x178   : > { %v467_v39 = vpack.c.bf16 %v466_v38, %v466_v38 }
 0x17a   : > { %802 = vmatmul.mubr.bf16.vlgmr.msra.gmra.mrb[4].mxu0 %v467_v39 }
 0x24d   : > { %v573_v41 = vpop.f32.mrb[4].mxu0 }
 0x24e   : > { %v574_v42 = vadd.f32 %v705_v40, %v573_v41  ;;  %v803_v43 = vpop.f32.mrb[5].mxu0 }
 0x24f   : > { %v576_v44 = vpop.f32.mrb[6].mxu0 }
 0x250   : > { %579 = vst [vmem:[%s295_s12] sm:$0xff] %v574_v42  ;;  %v804_v45 = vpop.f32.mrb[7].mxu0 }
 0x251   : > { %993 = shalt.err (!%p990_p2)
}
 0x252   : > { %s994_s18 = scalar_lea.hbm %s1326_s13, 128  ;;  %s998_s7 = scalar_lea.hbm %s1376_s6, 256 }
 0x253   : > { %p995_p13 = scmp.ne.s32.totalorder %s1326_s13, %s994_s18  ;;  %p999_p4 = scmp.lt.u32.totalorder %s1326_s13, %s1376_s6 }
 0x254   : > { %p1000_p5 = scmp.lt.u32.totalorder %s998_s7, %s994_s18  ;;  %p1002_p11 = scmp.lt.u32.totalorder %s994_s18, %s1326_s13 }
 0x255   : > { %p996_p6 = pnand %p995_p13, %p1390_p0 }
 0x256   : > { %p1001_p8 = por %p1000_p5, %p999_p4 }
 0x257   : > { %p997_p10 = pneg %p996_p6 }
 0x258   : > { %p1003_p1 = por %p1002_p11, %p1001_p8 }
 0x25a   : > { %p1004_p3 = pnand %p1003_p1, %p997_p10 }
 0x25c   : > { %1007 = shalt.err (!%p1004_p3)
}
 0x25d   : > { %815 = dma.vmem_to_hbm [thread:$0]  (%p1390_p0), %s1328_s20, 128, %s1326_s13, %s581_s25  }
 0x25e PF: > { %s606_s12 = sand.u32 1, %s1038_s21   ;;  %p1391_p7 = scmp.ne.s32.totalorder %s1381_s28, 0 }
 0x25f   : > { %p1392_p9 = scmp.ge.s32.totalorder %s1050_s24, 2  ;;  %s607_s15 = scalar_lea.sflag [#allocation4], %s606_s12 }
 0x261   : > { %p829_p12 = pnand %p1392_p9, %p1391_p7 }
 0x263   : > { %1033 = dma.done.wait (!%p829_p12), %s607_s15, 128  }
 0x264   : > { %1035 = vsyncadd (!%p829_p12), %s607_s15, 4294967168  ;;  %p20_p2 = scmp.ge.s32.totalorder %s1205_s26, 4   ;;  %s1393_s21 = smov %s1042_s22 }
 0x265   : > { %s1394_s22 = smov %s1046_s23  ;;  %s1395_s23 = smov %s1221_s11 }
 0x266   : > { %s1396_s24 = smov %s1205_s26  ;;  %22 = sbr.rel (!%p20_p2) target bundleno = 6 (0x6), region = 97 }
 0x26d   :  { %612 = vsyncpa [#allocation3], 1 }
 0x26e   :  { %614 = vsyncpa [#allocation3 + $0x1], 1 }
 0x26f   :  { %615 = vsyncpa [#allocation6], 1 }
 0x270   :  { %616 = vsyncpa [#allocation4], 1 }
 0x271   :  { %618 = vsyncpa [#allocation4 + $0x1], 1 }

</bundles_post_ra>
